<compile_context>
chip_gen: v6e
topology: v6e:2x2x1
jax: 0.10.0
libtpu: 0.0.40
codegen_flags: <defaults>
</compile_context>

<pallas_src>
import jax
import jax.numpy as jnp
from jax.experimental import pallas as pl
from jax.experimental.pallas import tpu as pltpu

_HIDDEN = (256, 128, 64)


def _mlp_kernel(x_ref, w1_ref, b1_ref, w2_ref, b2_ref, w3_ref, b3_ref,
                w4_ref, b4_ref, o_ref):
    # Fused 4-layer MLP: (Linear + ReLU) x3, then final Linear.
    # bf16 MXU inputs (x cast in-kernel), f32 accumulation / bias / ReLU.
    x = x_ref[...].astype(jnp.bfloat16)

    h = jnp.dot(x, w1_ref[...], preferred_element_type=jnp.float32)
    h = jnp.maximum(h + b1_ref[...], 0.0).astype(jnp.bfloat16)

    h = jnp.dot(h, w2_ref[...], preferred_element_type=jnp.float32)
    h = jnp.maximum(h + b2_ref[...], 0.0).astype(jnp.bfloat16)

    h = jnp.dot(h, w3_ref[...], preferred_element_type=jnp.float32)
    h = jnp.maximum(h + b3_ref[...], 0.0).astype(jnp.bfloat16)

    h = jnp.dot(h, w4_ref[...], preferred_element_type=jnp.float32)
    o_ref[...] = (h + b4_ref[...]).astype(o_ref.dtype)


def _round_up(v, m):
    return ((v + m - 1) // m) * m


def _vmem_capacity_bytes():
    try:
        return int(pltpu.get_tpu_info().vmem_capacity_bytes)
    except Exception:
        return 64 * 1024 * 1024  # conservative fallback (v7x per-core VMEM)


def _default_tile_b(B, F):
    """Batch tile: as large as comfortably fits VMEM, 128-row aligned, and for
    large batches >= 2 grid steps so v7x megacore can shard the batch axis."""
    vmem = _vmem_capacity_bytes()
    # Per-row VMEM bytes: double-buffered f32 x + (lane-padded) f32 out tiles,
    # f32+bf16 intermediates for the hidden layers, plus the in-kernel bf16 x.
    per_row = (2 * F * 4) + (2 * 128 * 4) + sum(_HIDDEN) * 6 + F * 2
    cap = max(256, ((vmem // 2) // per_row) // 128 * 128)
    max_tile = min(4096 if vmem >= (96 << 20) else 1536, cap)
    if B <= 256:
        return B                       # single small block; grid == 1 is fine
    # 128-row aligned tiles and >= 2 grid steps (v7x megacore sharding).
    return int(min(max_tile, _round_up(pl.cdiv(B, 2), 128)))


def _vmem_limit_bytes(tile_b, F, num_classes, prepped):
    weights = sum(int(prepped[f"w{i}"].size) for i in range(1, 5)) * 2
    biases = sum(int(prepped[f"b{i}"].size) for i in range(1, 5)) * 4
    io = 2 * tile_b * F * 4 + 2 * tile_b * max(num_classes, 128) * 4
    inter = tile_b * (sum(_HIDDEN) * 6 + F * 2)
    total = 2 * (weights + biases) + io + inter   # weights double-buffered
    limit = int(total * 1.5) + (8 << 20)          # compiler-scratch headroom
    vmem = _vmem_capacity_bytes()
    return int(min(max(limit, 32 << 20), vmem - (8 << 20)))


def init_params(key, num_features, num_classes):
    """Deterministic init matching nn.Linear shapes. PyTorch stores weight as
    [out, in]; we store the transpose [in, out] so the kernel computes x @ W
    without a transpose. These are the float32 'master' params."""
    dims = [(num_features, 256), (256, 128), (128, 64), (64, num_classes)]
    params = {}
    keys = jax.random.split(key, 2 * len(dims))
    for idx, (fan_in, fan_out) in enumerate(dims):
        bound = 1.0 / jnp.sqrt(fan_in)
        params[f"w{idx + 1}"] = jax.random.uniform(
            keys[2 * idx], (fan_in, fan_out), minval=-bound, maxval=bound,
            dtype=jnp.float32)
        params[f"b{idx + 1}"] = jax.random.uniform(
            keys[2 * idx + 1], (1, fan_out), minval=-bound, maxval=bound,
            dtype=jnp.float32)
    return params


def prepare_params(params):
    """One-time conversion to kernel layout: bf16 weights, f32 biases.
    Call once at setup (NOT per forward) so the casts are not re-run and
    re-written to HBM on every invocation."""
    prepped = {}
    for i in range(1, 5):
        prepped[f"w{i}"] = params[f"w{i}"].astype(jnp.bfloat16)
        prepped[f"b{i}"] = params[f"b{i}"].astype(jnp.float32)
    return prepped


def best_model_forward(x, prepped, *, tile_b=None):
    """Fused Pallas forward pass.

    x:       [B, num_features] float32 (cast to bf16 inside the kernel).
    prepped: output of prepare_params() — bf16 [in, out] weights, f32 biases.
    Returns  [B, num_classes] float32.
    """
    B, F = x.shape
    num_classes = prepped["w4"].shape[1]
    if tile_b is None:
        tile_b = _default_tile_b(B, F)
    tile_b = int(min(tile_b, B))

    grid = (pl.cdiv(B, tile_b),)

    def x_map(i):
        return (i, 0)

    def rep_map(i):
        return (0, 0)

    def full_spec(arr):
        # VMEM-resident weight/bias: same block every grid step.
        # TODO(synk): for very large num_features, give w1 a K-tiled grid axis
        # (accumulator scratch + pl.when init/finalize) instead of keeping the
        # whole [F,256] weight resident; unnecessary at these MLP sizes.
        return pl.BlockSpec(arr.shape, rep_map)

    in_specs = [
        pl.BlockSpec((tile_b, F), x_map),
        full_spec(prepped["w1"]), full_spec(prepped["b1"]),
        full_spec(prepped["w2"]), full_spec(prepped["b2"]),
        full_spec(prepped["w3"]), full_spec(prepped["b3"]),
        full_spec(prepped["w4"]), full_spec(prepped["b4"]),
    ]
    # HBM output is exactly [B, num_classes]: no lane padding, no post-slice.
    out_spec = pl.BlockSpec((tile_b, num_classes), x_map)

    flops = 2 * B * (F * 256 + 256 * 128 + 128 * 64 + 64 * num_classes)
    bytes_accessed = (
        B * F * 4
        + sum(int(prepped[f"w{i}"].size) for i in range(1, 5)) * 2
        + sum(int(prepped[f"b{i}"].size) for i in range(1, 5)) * 4
        + B * num_classes * 4)

    return pl.pallas_call(
        _mlp_kernel,
        out_shape=jax.ShapeDtypeStruct((B, num_classes), jnp.float32),
        grid_spec=pltpu.PrefetchScalarGridSpec(
            num_scalar_prefetch=0,
            grid=grid,
            in_specs=in_specs,
            out_specs=out_spec,
        ),
        compiler_params=pltpu.CompilerParams(
            dimension_semantics=("parallel",),
            vmem_limit_bytes=_vmem_limit_bytes(tile_b, F, num_classes, prepped),
        ),
        cost_estimate=pl.CostEstimate(
            flops=flops, transcendentals=0, bytes_accessed=bytes_accessed),
    )(x, prepped["w1"], prepped["b1"], prepped["w2"], prepped["b2"],
      prepped["w3"], prepped["b3"], prepped["w4"], prepped["b4"])


def reference_forward(x, params):
    h = jnp.maximum(x @ params["w1"] + params["b1"], 0.0)
    h = jnp.maximum(h @ params["w2"] + params["b2"], 0.0)
    h = jnp.maximum(h @ params["w3"] + params["b3"], 0.0)
    return h @ params["w4"] + params["b4"]


if __name__ == "__main__":
    key = jax.random.PRNGKey(0)
    num_features = 32
    num_classes = 8
    batch = 8

    k_x, k_p = jax.random.split(key)
    x = jax.random.normal(k_x, (batch, num_features), dtype=jnp.float32)
    params = init_params(k_p, num_features, num_classes)
    prepped = prepare_params(params)   # one-time weight conversion

    out = jax.block_until_ready(best_model_forward(x, prepped))
    ref = reference_forward(x, params)

    assert out.shape == (batch, num_classes)
    # bf16 matmul inputs (f32 accumulation) -> relaxed tolerance vs f32 ref.
    assert jnp.allclose(out, ref, atol=5e-2, rtol=5e-2), (
        float(jnp.max(jnp.abs(out - ref))))

    print("KERNEL_OK")
</pallas_src>

<mosaic_0001>
module attributes {stable_mosaic.version = 11 : i64} {
  func.func @_mlp_kernel(%arg0: i32, %arg1: memref<8x32xf32, #tpu.memory_space<vmem>>, %arg2: memref<32x256xbf16, #tpu.memory_space<vmem>>, %arg3: memref<1x256xf32, #tpu.memory_space<vmem>>, %arg4: memref<256x128xbf16, #tpu.memory_space<vmem>>, %arg5: memref<1x128xf32, #tpu.memory_space<vmem>>, %arg6: memref<128x64xbf16, #tpu.memory_space<vmem>>, %arg7: memref<1x64xf32, #tpu.memory_space<vmem>>, %arg8: memref<64x8xbf16, #tpu.memory_space<vmem>>, %arg9: memref<1x8xf32, #tpu.memory_space<vmem>>, %arg10: memref<8x8xf32, #tpu.memory_space<vmem>>) attributes {dimension_semantics = [#tpu.dimension_semantics<parallel>], iteration_bounds = array<i64: 1>, scalar_prefetch = 0 : i64, scratch_operands = 0 : i64, tpu.core_type = #tpu.core_type<tc>, window_params = [{transform_indices = @transform_0, window_bounds = array<i64: 8, 32>}, {pipeline_mode = #tpu.pipeline_mode<synchronous>, transform_indices = @transform_1, window_bounds = array<i64: 32, 256>}, {pipeline_mode = #tpu.pipeline_mode<synchronous>, transform_indices = @transform_2, window_bounds = array<i64: 1, 256>}, {pipeline_mode = #tpu.pipeline_mode<synchronous>, transform_indices = @transform_3, window_bounds = array<i64: 256, 128>}, {pipeline_mode = #tpu.pipeline_mode<synchronous>, transform_indices = @transform_4, window_bounds = array<i64: 1, 128>}, {pipeline_mode = #tpu.pipeline_mode<synchronous>, transform_indices = @transform_5, window_bounds = array<i64: 128, 64>}, {pipeline_mode = #tpu.pipeline_mode<synchronous>, transform_indices = @transform_6, window_bounds = array<i64: 1, 64>}, {pipeline_mode = #tpu.pipeline_mode<synchronous>, transform_indices = @transform_7, window_bounds = array<i64: 64, 8>}, {pipeline_mode = #tpu.pipeline_mode<synchronous>, transform_indices = @transform_8, window_bounds = array<i64: 1, 8>}, {transform_indices = @transform_9, window_bounds = array<i64: 8, 8>}]} {
    %c0 = arith.constant 0 : index
    %c0_0 = arith.constant 0 : index
    %0 = vector.load %arg1[%c0, %c0_0] : memref<8x32xf32, #tpu.memory_space<vmem>>, vector<8x32xf32>
    %1 = arith.truncf %0 : vector<8x32xf32> to vector<8x32xbf16>
    %c0_1 = arith.constant 0 : index
    %c0_2 = arith.constant 0 : index
    %2 = vector.load %arg2[%c0_1, %c0_2] : memref<32x256xbf16, #tpu.memory_space<vmem>>, vector<32x256xbf16>
    %cst = arith.constant dense<0.000000e+00> : vector<8x256xf32>
    %3 = tpu.matmul %1, %2, %cst {dimension_numbers = #tpu.dot_dimension_numbers<[1], [0], [0], [1], [0, 0, 1, 1], [], []>} : vector<8x32xbf16>, vector<32x256xbf16>, vector<8x256xf32> -> vector<8x256xf32>
    %c0_3 = arith.constant 0 : index
    %c0_4 = arith.constant 0 : index
    %4 = vector.load %arg3[%c0_3, %c0_4] : memref<1x256xf32, #tpu.memory_space<vmem>>, vector<1x256xf32>
    %5 = vector.broadcast %4 : vector<1x256xf32> to vector<8x256xf32>
    %6 = arith.addf %3, %5 : vector<8x256xf32>
    %cst_5 = arith.constant 0.000000e+00 : f32
    %7 = vector.broadcast %cst_5 : f32 to vector<8x256xf32>
    %8 = arith.maximumf %6, %7 : vector<8x256xf32>
    %9 = arith.truncf %8 : vector<8x256xf32> to vector<8x256xbf16>
    %c0_6 = arith.constant 0 : index
    %c0_7 = arith.constant 0 : index
    %10 = vector.load %arg4[%c0_6, %c0_7] : memref<256x128xbf16, #tpu.memory_space<vmem>>, vector<256x128xbf16>
    %cst_8 = arith.constant dense<0.000000e+00> : vector<8x128xf32>
    %11 = tpu.matmul %9, %10, %cst_8 {dimension_numbers = #tpu.dot_dimension_numbers<[1], [0], [0], [1], [0, 0, 1, 1], [], []>} : vector<8x256xbf16>, vector<256x128xbf16>, vector<8x128xf32> -> vector<8x128xf32>
    %c0_9 = arith.constant 0 : index
    %c0_10 = arith.constant 0 : index
    %12 = vector.load %arg5[%c0_9, %c0_10] : memref<1x128xf32, #tpu.memory_space<vmem>>, vector<1x128xf32>
    %13 = vector.broadcast %12 : vector<1x128xf32> to vector<8x128xf32>
    %14 = arith.addf %11, %13 : vector<8x128xf32>
    %cst_11 = arith.constant 0.000000e+00 : f32
    %15 = vector.broadcast %cst_11 : f32 to vector<8x128xf32>
    %16 = arith.maximumf %14, %15 : vector<8x128xf32>
    %17 = arith.truncf %16 : vector<8x128xf32> to vector<8x128xbf16>
    %c0_12 = arith.constant 0 : index
    %c0_13 = arith.constant 0 : index
    %18 = vector.load %arg6[%c0_12, %c0_13] : memref<128x64xbf16, #tpu.memory_space<vmem>>, vector<128x64xbf16>
    %cst_14 = arith.constant dense<0.000000e+00> : vector<8x64xf32>
    %19 = tpu.matmul %17, %18, %cst_14 {dimension_numbers = #tpu.dot_dimension_numbers<[1], [0], [0], [1], [0, 0, 1, 1], [], []>} : vector<8x128xbf16>, vector<128x64xbf16>, vector<8x64xf32> -> vector<8x64xf32>
    %c0_15 = arith.constant 0 : index
    %c0_16 = arith.constant 0 : index
    %20 = vector.load %arg7[%c0_15, %c0_16] : memref<1x64xf32, #tpu.memory_space<vmem>>, vector<1x64xf32>
    %21 = vector.broadcast %20 : vector<1x64xf32> to vector<8x64xf32>
    %22 = arith.addf %19, %21 : vector<8x64xf32>
    %cst_17 = arith.constant 0.000000e+00 : f32
    %23 = vector.broadcast %cst_17 : f32 to vector<8x64xf32>
    %24 = arith.maximumf %22, %23 : vector<8x64xf32>
    %25 = arith.truncf %24 : vector<8x64xf32> to vector<8x64xbf16>
    %c0_18 = arith.constant 0 : index
    %c0_19 = arith.constant 0 : index
    %26 = vector.load %arg8[%c0_18, %c0_19] : memref<64x8xbf16, #tpu.memory_space<vmem>>, vector<64x8xbf16>
    %cst_20 = arith.constant dense<0.000000e+00> : vector<8x8xf32>
    %27 = tpu.matmul %25, %26, %cst_20 {dimension_numbers = #tpu.dot_dimension_numbers<[1], [0], [0], [1], [0, 0, 1, 1], [], []>} : vector<8x64xbf16>, vector<64x8xbf16>, vector<8x8xf32> -> vector<8x8xf32>
    %c0_21 = arith.constant 0 : index
    %c0_22 = arith.constant 0 : index
    %28 = vector.load %arg9[%c0_21, %c0_22] : memref<1x8xf32, #tpu.memory_space<vmem>>, vector<1x8xf32>
    %29 = vector.broadcast %28 : vector<1x8xf32> to vector<8x8xf32>
    %30 = arith.addf %27, %29 : vector<8x8xf32>
    %c0_23 = arith.constant 0 : index
    %c0_24 = arith.constant 0 : index
    %31 = vector.load %arg10[%c0_23, %c0_24] : memref<8x8xf32, #tpu.memory_space<vmem>>, vector<8x8xf32>
    tpu.vector_store %arg10[%c0_23, %c0_24], %30 {strides = array<i32>} : memref<8x8xf32, #tpu.memory_space<vmem>>, vector<8x8xf32>,
    return
  }
  func.func @transform_0(%arg0: i32) -> (i32, i32) {
    %c0_i32 = arith.constant 0 : i32
    %c0_i32_0 = arith.constant 0 : i32
    return %arg0, %c0_i32 : i32, i32
  }
  func.func @transform_1(%arg0: i32) -> (i32, i32) {
    %c0_i32 = arith.constant 0 : i32
    %c0_i32_0 = arith.constant 0 : i32
    %c0_i32_1 = arith.constant 0 : i32
    return %c0_i32, %c0_i32_0 : i32, i32
  }
  func.func @transform_2(%arg0: i32) -> (i32, i32) {
    %c0_i32 = arith.constant 0 : i32
    %c0_i32_0 = arith.constant 0 : i32
    %c0_i32_1 = arith.constant 0 : i32
    return %c0_i32, %c0_i32_0 : i32, i32
  }
  func.func @transform_3(%arg0: i32) -> (i32, i32) {
    %c0_i32 = arith.constant 0 : i32
    %c0_i32_0 = arith.constant 0 : i32
    %c0_i32_1 = arith.constant 0 : i32
    return %c0_i32, %c0_i32_0 : i32, i32
  }
  func.func @transform_4(%arg0: i32) -> (i32, i32) {
    %c0_i32 = arith.constant 0 : i32
    %c0_i32_0 = arith.constant 0 : i32
    %c0_i32_1 = arith.constant 0 : i32
    return %c0_i32, %c0_i32_0 : i32, i32
  }
  func.func @transform_5(%arg0: i32) -> (i32, i32) {
    %c0_i32 = arith.constant 0 : i32
    %c0_i32_0 = arith.constant 0 : i32
    %c0_i32_1 = arith.constant 0 : i32
    return %c0_i32, %c0_i32_0 : i32, i32
  }
  func.func @transform_6(%arg0: i32) -> (i32, i32) {
    %c0_i32 = arith.constant 0 : i32
    %c0_i32_0 = arith.constant 0 : i32
    %c0_i32_1 = arith.constant 0 : i32
    return %c0_i32, %c0_i32_0 : i32, i32
  }
  func.func @transform_7(%arg0: i32) -> (i32, i32) {
    %c0_i32 = arith.constant 0 : i32
    %c0_i32_0 = arith.constant 0 : i32
    %c0_i32_1 = arith.constant 0 : i32
    return %c0_i32, %c0_i32_0 : i32, i32
  }
  func.func @transform_8(%arg0: i32) -> (i32, i32) {
    %c0_i32 = arith.constant 0 : i32
    %c0_i32_0 = arith.constant 0 : i32
    %c0_i32_1 = arith.constant 0 : i32
    return %c0_i32, %c0_i32_0 : i32, i32
  }
  func.func @transform_9(%arg0: i32) -> (i32, i32) {
    %c0_i32 = arith.constant 0 : i32
    %c0_i32_0 = arith.constant 0 : i32
    return %arg0, %c0_i32 : i32, i32
  }
}

</mosaic_0001>

<bundles_post_ra>
// kernel: tpu_custom_call.1
= control target key start
LH: loop header
LB: loop body
LE: loop exit
PB: predicated region body
PF: predicated region fallthrough
CT: control target
= control target key end

     0   :  { %14 = vsyncpa [#allocation3], 0  ;;  %s928_s0 = inlined_call_operand.vmem [shape: f32[8,32], index: 0, kind: input, shape index: {}]   ;;  %s929_s1 = inlined_call_operand.hbm [shape: bf16[32,256], index: 1, kind: input, shape index: {}]   ;;  %s930_s2 = inlined_call_operand.hbm [shape: f32[1,256], index: 2, kind: input, shape index: {}]   ;;  %s931_s3 = inlined_call_operand.vmem [shape: bf16[256,128], index: 3, kind: input, shape index: {}]   ;;  %s932_s4 = inlined_call_operand.vmem [shape: f32[1,128], index: 4, kind: input, shape index: {}]   ;;  %s933_s5 = inlined_call_operand.vmem [shape: bf16[128,64], index: 5, kind: input, shape index: {}]   ;;  %s934_s6 = inlined_call_operand.vmem [shape: f32[1,64], index: 6, kind: input, shape index: {}]   ;;  %s935_s7 = inlined_call_operand.vmem [shape: bf16[64,8], index: 7, kind: input, shape index: {}]   ;;  %s936_s8 = inlined_call_operand.vmem [shape: f32[1,8], index: 8, kind: input, shape index: {}]   ;;  %s937_s9 = inlined_call_operand.hbm [shape: f32[8,8], index: 9, kind: output, shape index: {}]  }
   0x1   :  { %15 = vsyncpa [#allocation6], 0 }
   0x2   :  { %16 = vsyncpa [#allocation4], 0  ;;  %s751_s30 = smov [#allocation2]  }
   0x3   :  { %s24_s10 = sshll.u32 %s751_s30, 4  ;;  %s25_s10 = int_to_ptr.vmem [resolvable:$true] %s24_s10 }
   0x4   :  { %s693_s11 = scalar_lea.vmem %s25_s10, 512  ;;  %p698_p1 = scmp.lt.s32.totalorder %s25_s10, %s25_s10 }
   0x5   :  { %p694_p0 = scmp.ne.s32.totalorder %s25_s10, %s693_s11  ;;  %p699_p2 = scmp.lt.s32.totalorder %s693_s11, %s693_s11 }
   0x7   :  { %p700_p3 = por %p699_p2, %p698_p1 }
   0x9   :  { %p701_p4 = pnand %p700_p3, %p694_p0 }
   0xb   :  { %704 = shalt.err (!%p701_p4)
}
   0xc   :  { %s752_s12 = smov 128   ;;  %s753_s13 = smov 8  }
   0xd   :  { %30 = dma.hbm_to_vmem [thread:$0]  %s929_s1, 512, %s25_s10, [#allocation3], %s752_s12, %s752_s12, %s753_s13  }
   0xe   :  { %s754_s16 = smov [#allocation5]  }
   0xf   :  { %s37_s17 = sshll.u32 %s754_s16, 4  ;;  %s38_s17 = int_to_ptr.vmem [resolvable:$true] %s37_s17 }
  0x10   :  { %s713_s18 = scalar_lea.vmem %s38_s17, 32  ;;  %p718_p6 = scmp.lt.s32.totalorder %s38_s17, %s38_s17 }
  0x11   :  { %p714_p5 = scmp.ne.s32.totalorder %s38_s17, %s713_s18  ;;  %p719_p7 = scmp.lt.s32.totalorder %s713_s18, %s713_s18 }
  0x13   :  { %p720_p8 = por %p719_p7, %p718_p6 }
  0x15   :  { %p721_p9 = pnand %p720_p8, %p714_p5 }
  0x17   :  { %724 = shalt.err (!%p721_p9)
}
  0x18   :  { %40 = dma.hbm_to_vmem [thread:$0]  %s930_s2, 32, %s38_s17, [#allocation6]  }
  0x19   :  { %745 = dma.done.wait [#allocation3], 512  }
  0x1a   :  { %746 = vsyncadd [#allocation3], 4294966784 }
  0x1b   :  { %747 = dma.done.wait [#allocation6], 32  }
  0x1c   :  { %748 = vsyncadd [#allocation6], 4294967264  ;;  %v755_v0 = vmov 0   ;;  %v651_v1 = vld [vmem:[#allocation2 + $0x14] ss:$8 sps:$4 sm:$0xff]   ;;  %v60_v5 = vld [vmem:[%s928_s0] sm:$0xff]  ;;  %v68_v29 = vlaneseq }
  0x1d   :  { %134 = vmatprep.mubr.bf16.mxu0 %v755_v0  ;;  %v653_v2 = vld [vmem:[#allocation2 + $0x10] ss:$8 sps:$4 sm:$0xff]   ;;  %114 = vmatprep.subr.bf16.mxu0 %v651_v1  ;;  %v654_v3 = vld [vmem:[#allocation2 + $0x4] ss:$8 sps:$4 sm:$0xff]   ;;  %v656_v4 = vld [vmem:[#allocation2] ss:$8 sps:$4 sm:$0xff]   ;;  %v61_v9 = vpack.c.bf16 %v60_v5, %v60_v5 }
  0x1e   :  { %115 = vmatpush1.bf16.msra.mxu0 %v653_v2  ;;  %v657_v6 = vld [vmem:[%s931_s3 + $0x78] sm:$0xff]   ;;  %v659_v8 = vld [vmem:[%s931_s3 + $0x70] sm:$0xff]   ;;  %vm98_vm0 = vcmask 261120   ;;  %v661_v11 = vld [vmem:[%s931_s3 + $0x68] sm:$0xff]   ;;  %v756_v24 = vmov 0.0   ;;  %v69_v30 = vshrl.u32 %v68_v29, 7 }
  0x1f   :  { %116 = vmatprep.subr.bf16.mxu0 %v654_v3  ;;  %v658_v7 = vld [vmem:[%s931_s3 + $0x38] sm:$0xff]   ;;  %575 = vmatprep.subr.bf16.mxu1 %v657_v6  ;;  %v660_v10 = vld [vmem:[%s931_s3 + $0x30] sm:$0xff]   ;;  %v662_v12 = vld [vmem:[%s931_s3 + $0x28] sm:$0xff]   ;;  %vm757_vm1 = vmmov 0   ;;  %vm476_vm2 = vcmask 523264   ;;  %s758_s10 = smov [#allocation7]  }
  0x20   :  { %576 = vmatpush3.bf16.msra.mxu1 %v658_v7  ;;  %v663_v13 = vld [vmem:[%s931_s3 + $0x60] sm:$0xff]   ;;  %v665_v15 = vld [vmem:[%s931_s3 + $0x58] sm:$0xff]   ;;  %v667_v17 = vld [vmem:[%s931_s3 + $0x50] sm:$0xff]   ;;  %v70_v31 = vsub.s32 0, %v69_v30  ;;  %v74_v33 = vsub.s32 1, %v69_v30  ;;  %vm520_vm3 = vcmask 64512  }
  0x21   :  { %577 = vmatprep.subr.bf16.mxu1 %v659_v8  ;;  %v664_v14 = vld [vmem:[%s931_s3 + $0x20] sm:$0xff]   ;;  %v666_v16 = vld [vmem:[%s931_s3 + $0x18] sm:$0xff]   ;;  %v668_v18 = vld [vmem:[%s931_s3 + $0x10] sm:$0xff]  }
  0x22   :  { %117 = vmatpush1.bf16.msra.mxu0 %v656_v4  ;;  %v669_v19 = vld [vmem:[%s931_s3 + $0x48] sm:$0xff]   ;;  %v671_v21 = vld [vmem:[%s931_s3 + $0x40] sm:$0xff]   ;;  %v673_v23 = vld [vmem:[%s933_s5 + $0x38] sm:$0xff]  }
  0x23   :  { %v670_v20 = vld [vmem:[%s931_s3 + $0x8] sm:$0xff]   ;;  %v672_v22 = vld [vmem:[%s931_s3] sm:$0xff]   ;;  %611 = vmatprep.subr.bf16.mxu0 %v756_v24  ;;  %v674_v25 = vld [vmem:[%s933_s5 + $0x30] sm:$0xff]  }
  0x24   :  { %578 = vmatpush3.bf16.msra.mxu1 %v660_v10  ;;  %v675_v26 = vld [vmem:[%s933_s5 + $0x28] sm:$0xff]   ;;  %v676_v27 = vld [vmem:[%s933_s5 + $0x20] sm:$0xff]   ;;  %v677_v28 = vld [vmem:[%s933_s5 + $0x18] sm:$0xff]  }
  0x25   :  { %542 = vmatmul.mubr.msk.bf16.vlgmr.msra.gmra.mxu0 %vm98_vm0, %v61_v9  ;;  %579 = vmatprep.subr.bf16.mxu1 %v661_v11  ;;  %v66_v32 = vld [vmem:[#allocation5] sm:$0x3]  ;;  %v678_v46 = vld [vmem:[%s933_s5 + $0x10] sm:$0xff]   ;;  %v679_v47 = vld [vmem:[%s933_s5 + $0x8] sm:$0xff]  }
  0x26   :  { %612 = vmatpush3.bf16.msra.mxu0 %v673_v23  ;;  %v71_v34 = vrot.slane %v66_v32, %v70_v31  ;;  %v75_v35 = vrot.slane %v66_v32, %v74_v33  ;;  %v680_v48 = vld [vmem:[%s933_s5] sm:$0xff]   ;;  %627 = vmatprep.mubr.msk.bf16.mxu0 %vm757_vm1, %v756_v24  ;;  %v681_v49 = vld [vmem:[%s935_s7 + $0x18] sm:$0xff]   ;;  %v682_v50 = vld [vmem:[%s935_s7 + $0x10] sm:$0xff]  }
  0x27   :  { %613 = vmatprep.subr.bf16.mxu0 %v756_v24  ;;  %v543_v52 = vld [vmem:[%s932_s4] ss:$0 sm:$0xff]  ;;  %v683_v60 = vld [vmem:[%s935_s7 + $0x8] sm:$0xff]  }
  0x28   :  { %580 = vmatpush3.bf16.msra.mxu1 %v662_v12  ;;  %v684_v61 = vld [vmem:[%s935_s7] sm:$0xff]   ;;  %s528_s7 = sshll.u32 %s758_s10, 4  ;;  %s529_s7 = int_to_ptr.vmem [resolvable:$true] %s528_s7 }
  0x29   :  { %581 = vmatprep.subr.bf16.mxu1 %v663_v13  ;;  %v560_v62 = vld [vmem:[%s934_s6] ss:$0 sm:$0xff]  ;;  %s725_s6 = scalar_lea.vmem %s529_s7, 128  ;;  %p730_p11 = scmp.lt.s32.totalorder %s529_s7, %s529_s7 }
  0x2a   :  { %614 = vmatpush3.bf16.msra.mxu0 %v674_v25  ;;  %v569_v6 = vld [vmem:[%s936_s8] ss:$0 sm:$0xff]  ;;  %p726_p10 = scmp.ne.s32.totalorder %s529_s7, %s725_s6  ;;  %p731_p12 = scmp.lt.s32.totalorder %s725_s6, %s725_s6 }
  0x2b   :  { %615 = vmatprep.subr.bf16.mxu0 %v756_v24 }
  0x2c   :  { %582 = vmatpush3.bf16.msra.mxu1 %v664_v14  ;;  %p732_p13 = por %p731_p12, %p730_p11 }
  0x2d   :  { %583 = vmatprep.subr.bf16.mxu1 %v665_v15 }
  0x2e   :  { %616 = vmatpush3.bf16.msra.mxu0 %v675_v26  ;;  %p733_p0 = pnand %p732_p13, %p726_p10 }
  0x2f   :  { %617 = vmatprep.subr.bf16.mxu0 %v756_v24 }
  0x30   :  { %584 = vmatpush3.bf16.msra.mxu1 %v666_v16 }
  0x31   :  { %585 = vmatprep.subr.bf16.mxu1 %v667_v17 }
  0x32   :  { %618 = vmatpush3.bf16.msra.mxu0 %v676_v27 }
  0x33   :  { %619 = vmatprep.subr.bf16.mxu0 %v756_v24 }
  0x34   :  { %586 = vmatpush3.bf16.msra.mxu1 %v668_v18 }
  0x35   :  { %587 = vmatprep.subr.bf16.mxu1 %v669_v19 }
  0x36   :  { %620 = vmatpush3.bf16.msra.mxu0 %v677_v28 }
  0x37   :  { %621 = vmatprep.subr.bf16.mxu0 %v756_v24 }
  0x38   :  { %588 = vmatpush3.bf16.msra.mxu1 %v670_v20 }
  0x39   :  { %589 = vmatprep.subr.bf16.mxu1 %v671_v21 }
  0x3a   :  { %622 = vmatpush3.bf16.msra.mxu0 %v678_v46 }
  0x3b   :  { %623 = vmatprep.subr.bf16.mxu0 %v756_v24 }
  0x3c   :  { %590 = vmatpush3.bf16.msra.mxu1 %v672_v22 }
  0x3d   :  { %631 = vmatprep.subr.bf16.mxu1 %v756_v24 }
  0x3e   :  { %624 = vmatpush3.bf16.msra.mxu0 %v679_v47 }
  0x3f   :  { %625 = vmatprep.subr.bf16.mxu0 %v756_v24 }
  0x42   :  { %626 = vmatpush3.bf16.msra.mxu0 %v680_v48 }
  0xe5   :  { %v136_v36 = vpop.f32.mrf.mxu0 }
  0xe6   :  { %v137_v37 = vadd.f32 %v136_v36, %v71_v34 }
  0xe7   :  { %v138_v38 = vpop.f32.mrf.mxu0 }
  0xe8   :  { %v139_v39 = vadd.f32 %v138_v38, %v75_v35  ;;  %v143_v40 = vmax.f32 %v137_v37, 0.0 }
  0xe9   :  { %v140_v41 = vpop.f32.mrf.mxu0 }
  0xea   :  { %v144_v42 = vmax.f32 %v139_v39, 0.0  ;;  %v145_v45 = vpack.c.bf16 %v143_v40, %v143_v40 }
  0xeb   :  { %v141_v43 = vpop.f32.mrf.mxu0 }
  0xec   :  { %v146_v44 = vpack.c.bf16 %v144_v42, %v144_v42 }
  0xee   :  { %314 = vmatprep.mubr.bf16.mxu1 %v146_v44 }
  0xef   :  { %315 = vmatmul.mubr.bf16.vlgmr.msra.gmra.mxu1 %v145_v45 }
  0xf0   :  { %639 = vmatprep.mubr.msk.bf16.mxu1 %vm757_vm1, %v756_v24  ;;  %632 = vmatpush3.bf16.msra.mxu1 %v681_v49 }
  0xf1   :  { %633 = vmatprep.subr.bf16.mxu1 %v756_v24 }
  0xf4   :  { %634 = vmatpush3.bf16.msra.mxu1 %v682_v50 }
  0xf5   :  { %635 = vmatprep.subr.bf16.mxu1 %v756_v24 }
  0xf8   :  { %636 = vmatpush3.bf16.msra.mxu1 %v683_v60 }
  0xf9   :  { %637 = vmatprep.subr.bf16.mxu1 %v756_v24 }
  0xfc   :  { %638 = vmatpush3.bf16.msra.mxu1 %v684_v61 }
 0x1af   :  { %v591_v51 = vpop.f32.mrf.mxu1 }
 0x1b1   :  { %v592_v53 = vpop.f32.mrf.mxu1 }
 0x1b2   :  { %v593_v54 = vadd.f32 %v592_v53, %v591_v51 }
 0x1b3   :  { %v594_v55 = vpop.f32.mrf.mxu1 }
 0x1b4   :  { %v317_v56 = vadd.f32 %v593_v54, %v543_v52 }
 0x1b5   :  { %v595_v57 = vpop.f32.mrf.mxu1 }
 0x1b6   :  { %v322_v58 = vmax.f32 %v317_v56, 0.0 }
 0x1b8   :  { %v323_v59 = vpack.c.bf16 %v322_v58, %v322_v58 }
 0x1ba   :  { %628 = vmatmul.mubr.bf16.vlgmr.msra.gmra.mxu0 %v323_v59 }
 0x27a   :  { %v429_v63 = vpop.f32.mrf.mxu0 }
 0x27b   :  { %v430_v0 = vadd.f32 %v560_v62, %v429_v63 }
 0x27c   :  { %v629_v1 = vpop.f32.mrf.mxu0 }
 0x27d   :  { %v435_v2 = vmax.f32 %v430_v0, 0.0 }
 0x27e   :  { %v432_v3 = vpop.f32.mrf.mxu0 }
 0x27f   :  { %v436_v4 = vpack.c.bf16 %v435_v2, %v435_v2 }
 0x280   :  { %v630_v5 = vpop.f32.mrf.mxu0 }
 0x281   :  { %640 = vmatmul.mubr.msk.bf16.vlgmr.msra.gmra.mxu1 %vm476_vm2, %v436_v4 }
 0x341   :  { %v514_v7 = vpop.f32.mrf.mxu1 }
 0x342   :  { %v515_v8 = vadd.f32 %v569_v6, %v514_v7 }
 0x343   :  { %v641_v9 = vpop.f32.mrf.mxu1 }
 0x344   :  { %521 = vst.msk [vmem:[#allocation7] sm:$0xff] %vm520_vm3, %v515_v8 }
 0x345   :  { %v517_v10 = vpop.f32.mrf.mxu1 }
 0x346   :  { %736 = shalt.err (!%p733_p0)
}
 0x347   :  { %531 = dma.vmem_to_hbm [thread:$0]  %s529_s7, 128, %s937_s9, [#allocation4]   ;;  %v642_v11 = vpop.f32.mrf.mxu1 }
 0x348   :  { %749 = dma.done.wait [#allocation4], 128  }
 0x349   :  { %750 = vsyncadd [#allocation4], 4294967168 }
 0x34a   :  { %535 = vsyncpa [#allocation3], 1 }
 0x34b   :  { %536 = vsyncpa [#allocation6], 1 }
 0x34c   :  { %537 = vsyncpa [#allocation4], 1 }

</bundles_post_ra>
